<compile_context>
chip_gen: v6e
topology: v6e:2x2x1
jax: 0.10.0
libtpu: 0.0.40
codegen_flags: <defaults>
</compile_context>

<pallas_src>
import functools

import jax
import jax.numpy as jnp
from jax.experimental import pallas as pl
from jax.experimental.pallas import tpu as pltpu


_SUBLANES = 8  # f32 sublanes per vreg


def _kd_loss_kernel(x_ref, t_ref, o_ref, acc_ref, *,
                    temp_factor, batch_size, row_tile, tiles_per_split,
                    mask_needed):
    i = pl.program_id(1)

    @pl.when(i == 0)
    def _():
        acc_ref[...] = jnp.zeros_like(acc_ref)

    inv_t = jnp.float32(1.0 / temp_factor)

    # Student branch first: only the per-row logsumexp stats are needed
    # (log_p is never materialized); keeps fewer (row_tile, C) f32 tiles live.
    x = x_ref[...].astype(jnp.float32)
    if temp_factor != 1.0:
        x = x * inv_t
    x_sh = x - jnp.max(x, axis=-1, keepdims=True)
    log_zx = jnp.log(jnp.sum(jnp.exp(x_sh), axis=-1, keepdims=True))

    # Teacher: reuse exp(t_sh) for both the softmax and its log-normalizer
    # (2 exps per element total).
    t = t_ref[...].astype(jnp.float32)
    if temp_factor != 1.0:
        t = t * inv_t
    t_sh = t - jnp.max(t, axis=-1, keepdims=True)
    e_t = jnp.exp(t_sh)
    sum_t = jnp.sum(e_t, axis=-1, keepdims=True)
    log_zt = jnp.log(sum_t)

    # q * (log q - log p) = q * ((t_sh - x_sh) + (logZx - logZt))  (sum_c q == 1)
    term = (e_t * (jnp.float32(1.0) / sum_t)) * ((t_sh - x_sh) + (log_zx - log_zt))

    def accumulate(v):
        # Cross-vreg VPU adds only; sublane/lane reduction happens once, outside.
        acc_ref[...] += v.reshape(row_tile // _SUBLANES, _SUBLANES, -1).sum(axis=0)

    if mask_needed:
        # Global row-tile index of this grid step (scalar).
        g = pl.program_id(0) * tiles_per_split + i
        tile_overruns = (g + 1) * row_tile > batch_size

        @pl.when(tile_overruns)
        def _():
            # Per-row (row_tile, 1) mask, only on tiles that reach past the
            # true batch (ragged last tile / phantom split tiles).
            row_ids = g * row_tile + jax.lax.broadcasted_iota(
                jnp.int32, (row_tile, 1), 0)
            accumulate(jnp.where(row_ids < batch_size, term, jnp.float32(0.0)))

        @pl.when(jnp.logical_not(tile_overruns))
        def _():
            accumulate(term)
    else:
        accumulate(term)

    @pl.when(i == pl.num_programs(1) - 1)
    def _():
        o_ref[0] = acc_ref[...]


def _big_vmem_part():
    """True on 128 MiB-VMEM parts (v5e/v6e); False on v7x / unknown."""
    try:
        return pltpu.get_tpu_info().vmem_capacity_bytes >= (100 << 20)
    except Exception:
        pass
    try:
        kind = jax.devices()[0].device_kind.lower()
        return ("v7" not in kind) and ("7x" not in kind)
    except Exception:
        return False


def kd_loss(x, target, temp_factor, *, row_tile=None, num_splits=None,
            vmem_limit_bytes=None):
    """Pallas KDLoss. x, target: [N, C] logits (f32 or bf16). Returns scalar f32."""
    N, C = x.shape
    assert target.shape == (N, C), (x.shape, target.shape)

    itemsize = max(jnp.dtype(x.dtype).itemsize, jnp.dtype(target.dtype).itemsize)
    row_align = max(_SUBLANES, 32 // itemsize)   # 8 f32, 16 bf16, 32 int8/fp8
    c_pad = ((C + 127) // 128) * 128             # lanes pad to 128 in VMEM

    # Pad tiny batches up to one aligned row group; padded rows are masked
    # inside the kernel (batch_size below stays the true N).
    n_rows = N
    if n_rows < row_align:
        pad = row_align - n_rows
        x = jnp.pad(x, ((0, pad), (0, 0)))
        target = jnp.pad(target, ((0, pad), (0, 0)))
        n_rows = row_align

    big_vmem = _big_vmem_part()

    if row_tile is None:
        # ~2 MiB / input tile on 128 MiB-VMEM parts (v5e/v6e) to amortize the
        # ~0.35 us per-step overhead; ~1 MiB on v7x (64 MiB VMEM per TC).
        target_bytes = (2 << 20) if big_vmem else (1 << 20)
        row_tile = max(row_align, target_bytes // (c_pad * itemsize))
    row_tile = int(row_tile)
    row_tile = ((row_tile + row_align - 1) // row_align) * row_align
    row_tile = min(row_tile, (n_rows // row_align) * row_align)
    row_tile = max(row_tile, row_align)

    tiles_total = pl.cdiv(n_rows, row_tile)
    if num_splits is None:
        # Leading "parallel" axis: both TensorCores on v7x; a cheap serial
        # 2-chunk loop elsewhere.
        num_splits = 2 if tiles_total >= 2 else 1
    num_splits = max(1, int(num_splits))
    tiles_per_split = pl.cdiv(tiles_total, num_splits)

    # Any padded / ragged / phantom rows at all? (trace-time bool)
    mask_needed = (num_splits * tiles_per_split * row_tile) != N
    phantom_tiles = (num_splits * tiles_per_split) != tiles_total
    last_block = tiles_total - 1

    def row_block_map(c, i):
        g = c * tiles_per_split + i
        if phantom_tiles:
            # Clamp phantom steps onto the last real tile; they're fully masked
            # in-kernel, so we only avoid an out-of-bounds DMA here.
            g = jnp.minimum(g, last_block)
        return (g, 0)

    if vmem_limit_bytes is None:
        # 2 inputs x 2 pipeline buffers + ~6 live f32 compute tiles.
        tile_in = row_tile * c_pad * itemsize
        tile_f32 = row_tile * c_pad * 4
        needed = 4 * tile_in + 6 * tile_f32 + (2 << 20)
        cap = (40 << 20) if big_vmem else (32 << 20)   # v7x: only 64 MiB VMEM/TC
        vmem_limit_bytes = int(min(max(needed, 16 << 20), cap))

    kernel = functools.partial(
        _kd_loss_kernel,
        temp_factor=float(temp_factor),
        batch_size=int(N),
        row_tile=int(row_tile),
        tiles_per_split=int(tiles_per_split),
        mask_needed=bool(mask_needed),
    )

    partials = pl.pallas_call(
        kernel,
        out_shape=jax.ShapeDtypeStruct((num_splits, _SUBLANES, C), jnp.float32),
        grid_spec=pltpu.PrefetchScalarGridSpec(
            num_scalar_prefetch=0,
            grid=(num_splits, tiles_per_split),
            in_specs=[
                pl.BlockSpec((row_tile, C), row_block_map),
                pl.BlockSpec((row_tile, C), row_block_map),
            ],
            out_specs=pl.BlockSpec((1, _SUBLANES, C), lambda c, i: (c, 0, 0)),
            scratch_shapes=[pltpu.VMEM((_SUBLANES, C), jnp.float32)],
        ),
        compiler_params=pltpu.CompilerParams(
            # per-split resident accumulator across the row-tile axis; the
            # split axis is independent (one per TensorCore on v7x).
            dimension_semantics=("parallel", "arbitrary"),
            vmem_limit_bytes=vmem_limit_bytes,
        ),
    )(x, target)

    scale = jnp.float32(float(temp_factor) * float(temp_factor) / N)
    return jnp.sum(partials) * scale


def kd_loss_ref(x, target, temp_factor):
    """Pure-JAX reference mirroring the PyTorch module."""
    log_p = jax.nn.log_softmax(x / temp_factor, axis=1)
    q = jax.nn.softmax(target / temp_factor, axis=1)
    kl = jnp.sum(q * (jnp.log(q) - log_p))
    return kl * (temp_factor ** 2) / x.shape[0]


if __name__ == "__main__":
    key = jax.random.PRNGKey(0)
    k1, k2 = jax.random.split(key)

    N, C = 24, 128          # small batch, 128 classes (lane-aligned)
    TEMP = 4.0

    x = jax.random.normal(k1, (N, C), dtype=jnp.float32) * 3.0   # student logits
    t = jax.random.normal(k2, (N, C), dtype=jnp.float32) * 3.0   # teacher logits

    ref = kd_loss_ref(x, t, TEMP)

    # Auto row tile (single block, no masking / single split).
    loss_auto = jax.block_until_ready(kd_loss(x, t, TEMP))
    # Explicit 16-row tile: 2 tiles -> 2-way split + ragged-tail masking path.
    loss_tiled = jax.block_until_ready(kd_loss(x, t, TEMP, row_tile=16))
    # Explicit 8-row tile: 3 tiles -> odd split -> phantom-tile clamp + full-mask path.
    loss_phantom = jax.block_until_ready(kd_loss(x, t, TEMP, row_tile=8))

    assert jnp.allclose(loss_auto, ref, rtol=1e-5, atol=1e-5), (loss_auto, ref)
    assert jnp.allclose(loss_tiled, ref, rtol=1e-5, atol=1e-5), (loss_tiled, ref)
    assert jnp.allclose(loss_phantom, ref, rtol=1e-5, atol=1e-5), (loss_phantom, ref)

    print("KERNEL_OK")
</pallas_src>

<mosaic_0001>
module attributes {stable_mosaic.version = 11 : i64} {
  func.func @_kd_loss_kernel(%arg0: i32, %arg1: i32, %arg2: memref<24x128xf32, #tpu.memory_space<vmem>>, %arg3: memref<24x128xf32, #tpu.memory_space<vmem>>, %arg4: memref<1x8x128xf32, #tpu.memory_space<vmem>>, %arg5: memref<8x128xf32, #tpu.memory_space<vmem>>) attributes {dimension_semantics = [#tpu.dimension_semantics<parallel>, #tpu.dimension_semantics<arbitrary>], iteration_bounds = array<i64: 1, 1>, scalar_prefetch = 0 : i64, scratch_operands = 1 : i64, tpu.core_type = #tpu.core_type<tc>, window_params = [{transform_indices = @transform_0, window_bounds = array<i64: 24, 128>}, {transform_indices = @transform_1, window_bounds = array<i64: 24, 128>}, {transform_indices = @transform_2, window_bounds = array<i64: 1, 8, 128>}]} {
    %c0_i32 = arith.constant 0 : i32
    %0 = arith.cmpi eq, %arg1, %c0_i32 : i32
    %1 = arith.extui %0 : i1 to i32
    %c0_i32_0 = arith.constant 0 : i32
    %2 = arith.cmpi ne, %1, %c0_i32_0 : i32
    scf.if %2 {
      %cst_17 = arith.constant 0.000000e+00 : f32
      %42 = vector.broadcast %cst_17 : f32 to vector<8x128xf32>
      %c0_18 = arith.constant 0 : index
      %c0_19 = arith.constant 0 : index
      %43 = vector.load %arg5[%c0_18, %c0_19] : memref<8x128xf32, #tpu.memory_space<vmem>>, vector<8x128xf32>
      tpu.vector_store %arg5[%c0_18, %c0_19], %42 {strides = array<i32>} : memref<8x128xf32, #tpu.memory_space<vmem>>, vector<8x128xf32>,
    } else {
    }
    %c0 = arith.constant 0 : index
    %c0_1 = arith.constant 0 : index
    %3 = vector.load %arg2[%c0, %c0_1] : memref<24x128xf32, #tpu.memory_space<vmem>>, vector<24x128xf32>
    %cst = arith.constant 2.500000e-01 : f32
    %4 = vector.broadcast %cst : f32 to vector<24x128xf32>
    %5 = arith.mulf %3, %4 : vector<24x128xf32>
    %cst_2 = arith.constant dense<0xFF800000> : vector<24xf32>
    %6 = vector.multi_reduction <maximumf>, %5, %cst_2 [1] : vector<24x128xf32> to vector<24xf32>
    %7 = vector.shape_cast %6 : vector<24xf32> to vector<24x1xf32>
    %8 = vector.broadcast %7 : vector<24x1xf32> to vector<24x128xf32>
    %9 = arith.subf %5, %8 : vector<24x128xf32>
    %10 = math.exp %9 : vector<24x128xf32>
    %cst_3 = arith.constant dense<0.000000e+00> : vector<24xf32>
    %11 = vector.multi_reduction <add>, %10, %cst_3 [1] : vector<24x128xf32> to vector<24xf32>
    %12 = vector.shape_cast %11 : vector<24xf32> to vector<24x1xf32>
    %13 = math.log %12 : vector<24x1xf32>
    %c0_4 = arith.constant 0 : index
    %c0_5 = arith.constant 0 : index
    %14 = vector.load %arg3[%c0_4, %c0_5] : memref<24x128xf32, #tpu.memory_space<vmem>>, vector<24x128xf32>
    %cst_6 = arith.constant 2.500000e-01 : f32
    %15 = vector.broadcast %cst_6 : f32 to vector<24x128xf32>
    %16 = arith.mulf %14, %15 : vector<24x128xf32>
    %cst_7 = arith.constant dense<0xFF800000> : vector<24xf32>
    %17 = vector.multi_reduction <maximumf>, %16, %cst_7 [1] : vector<24x128xf32> to vector<24xf32>
    %18 = vector.shape_cast %17 : vector<24xf32> to vector<24x1xf32>
    %19 = vector.broadcast %18 : vector<24x1xf32> to vector<24x128xf32>
    %20 = arith.subf %16, %19 : vector<24x128xf32>
    %21 = math.exp %20 : vector<24x128xf32>
    %cst_8 = arith.constant dense<0.000000e+00> : vector<24xf32>
    %22 = vector.multi_reduction <add>, %21, %cst_8 [1] : vector<24x128xf32> to vector<24xf32>
    %23 = vector.shape_cast %22 : vector<24xf32> to vector<24x1xf32>
    %24 = math.log %23 : vector<24x1xf32>
    %cst_9 = arith.constant 1.000000e+00 : f32
    %25 = vector.broadcast %cst_9 : f32 to vector<24x1xf32>
    %26 = arith.divf %25, %23 : vector<24x1xf32>
    %27 = vector.broadcast %26 : vector<24x1xf32> to vector<24x128xf32>
    %28 = arith.mulf %21, %27 : vector<24x128xf32>
    %29 = arith.subf %20, %9 : vector<24x128xf32>
    %30 = arith.subf %13, %24 : vector<24x1xf32>
    %31 = vector.broadcast %30 : vector<24x1xf32> to vector<24x128xf32>
    %32 = arith.addf %29, %31 : vector<24x128xf32>
    %33 = arith.mulf %28, %32 : vector<24x128xf32>
    %c0_10 = arith.constant 0 : index
    %c0_11 = arith.constant 0 : index
    %34 = vector.load %arg5[%c0_10, %c0_11] : memref<8x128xf32, #tpu.memory_space<vmem>>, vector<8x128xf32>
    %35 = vector.shape_cast %33 : vector<24x128xf32> to vector<3x8x128xf32>
    %cst_12 = arith.constant dense<0.000000e+00> : vector<8x128xf32>
    %36 = vector.multi_reduction <add>, %35, %cst_12 [0] : vector<3x8x128xf32> to vector<8x128xf32>
    %37 = arith.addf %34, %36 : vector<8x128xf32>
    %c0_13 = arith.constant 0 : index
    %c0_14 = arith.constant 0 : index
    %38 = vector.load %arg5[%c0_13, %c0_14] : memref<8x128xf32, #tpu.memory_space<vmem>>, vector<8x128xf32>
    tpu.vector_store %arg5[%c0_13, %c0_14], %37 {strides = array<i32>} : memref<8x128xf32, #tpu.memory_space<vmem>>, vector<8x128xf32>,
    %c0_i32_15 = arith.constant 0 : i32
    %39 = arith.cmpi eq, %arg1, %c0_i32_15 : i32
    %40 = arith.extui %39 : i1 to i32
    %c0_i32_16 = arith.constant 0 : i32
    %41 = arith.cmpi ne, %40, %c0_i32_16 : i32
    scf.if %41 {
      %c0_17 = arith.constant 0 : index
      %c0_18 = arith.constant 0 : index
      %42 = vector.load %arg5[%c0_17, %c0_18] : memref<8x128xf32, #tpu.memory_space<vmem>>, vector<8x128xf32>
      %c0_19 = arith.constant 0 : index
      %c0_20 = arith.constant 0 : index
      %c0_21 = arith.constant 0 : index
      %43 = vector.load %arg4[%c0_19, %c0_20, %c0_21] : memref<1x8x128xf32, #tpu.memory_space<vmem>>, vector<1x8x128xf32>
      %44 = vector.shape_cast %43 : vector<1x8x128xf32> to vector<8x128xf32>
      %45 = vector.shape_cast %42 : vector<8x128xf32> to vector<1x8x128xf32>
      tpu.vector_store %arg4[%c0_19, %c0_20, %c0_21], %45 {strides = array<i32>} : memref<1x8x128xf32, #tpu.memory_space<vmem>>, vector<1x8x128xf32>,
    } else {
    }
    return
  }
  func.func @transform_0(%arg0: i32, %arg1: i32) -> (i32, i32) {
    %c1_i32 = arith.constant 1 : i32
    %0 = arith.muli %arg0, %c1_i32 : i32
    %1 = arith.addi %0, %arg1 : i32
    %c0_i32 = arith.constant 0 : i32
    %c0_i32_0 = arith.constant 0 : i32
    return %1, %c0_i32 : i32, i32
  }
  func.func @transform_1(%arg0: i32, %arg1: i32) -> (i32, i32) {
    %c1_i32 = arith.constant 1 : i32
    %0 = arith.muli %arg0, %c1_i32 : i32
    %1 = arith.addi %0, %arg1 : i32
    %c0_i32 = arith.constant 0 : i32
    %c0_i32_0 = arith.constant 0 : i32
    return %1, %c0_i32 : i32, i32
  }
  func.func @transform_2(%arg0: i32, %arg1: i32) -> (i32, i32, i32) {
    %c0_i32 = arith.constant 0 : i32
    %c0_i32_0 = arith.constant 0 : i32
    %c0_i32_1 = arith.constant 0 : i32
    return %arg0, %c0_i32, %c0_i32_0 : i32, i32, i32
  }
}

</mosaic_0001>

<bundles_post_ra>
// kernel: tpu_custom_call.1
= control target key start
LH: loop header
LB: loop body
LE: loop exit
PB: predicated region body
PF: predicated region fallthrough
CT: control target
= control target key end

     0   :  { %7 = vsyncpa [#allocation4], 0  ;;  %s308_s0 = inlined_call_operand.hbm [shape: f32[24,128], index: 0, kind: input, shape index: {}]   ;;  %s309_s1 = inlined_call_operand.hbm [shape: f32[24,128], index: 1, kind: input, shape index: {}]   ;;  %s310_s2 = inlined_call_operand.hbm [shape: f32[1,8,128], index: 2, kind: output, shape index: {}]  }
   0x1   :  { %8 = vsyncpa [#allocation7], 0 }
   0x2   :  { %9 = vsyncpa [#allocation5], 0  ;;  %s271_s9 = smov [#allocation3]  }
   0x3   :  { %s19_s10 = sshll.u32 %s271_s9, 4  ;;  %s20_s10 = int_to_ptr.vmem [resolvable:$true] %s19_s10 }
   0x4   :  { %s213_s11 = scalar_lea.vmem %s20_s10, 384  ;;  %p218_p1 = scmp.lt.s32.totalorder %s20_s10, %s20_s10 }
   0x5   :  { %p214_p0 = scmp.ne.s32.totalorder %s20_s10, %s213_s11  ;;  %p219_p2 = scmp.lt.s32.totalorder %s213_s11, %s213_s11 }
   0x7   :  { %p220_p3 = por %p219_p2, %p218_p1 }
   0x9   :  { %p221_p4 = pnand %p220_p3, %p214_p0 }
   0xb   :  { %224 = shalt.err (!%p221_p4)
}
   0xc   :  { %s272_s12 = smov 128   ;;  %s273_s13 = smov 8  }
   0xd   :  { %25 = dma.hbm_to_vmem [thread:$0]  %s308_s0, 384, %s20_s10, [#allocation4], %s272_s12, %s272_s12, %s273_s13  }
   0xe   :  { %s274_s16 = smov [#allocation6]  }
   0xf   :  { %s35_s17 = sshll.u32 %s274_s16, 4  ;;  %s36_s17 = int_to_ptr.vmem [resolvable:$true] %s35_s17 }
  0x10   :  { %s233_s18 = scalar_lea.vmem %s36_s17, 384  ;;  %p238_p6 = scmp.lt.s32.totalorder %s36_s17, %s36_s17 }
  0x11   :  { %p234_p5 = scmp.ne.s32.totalorder %s36_s17, %s233_s18  ;;  %p239_p7 = scmp.lt.s32.totalorder %s233_s18, %s233_s18 }
  0x13   :  { %p240_p8 = por %p239_p7, %p238_p6 }
  0x15   :  { %p241_p9 = pnand %p240_p8, %p234_p5 }
  0x17   :  { %244 = shalt.err (!%p241_p9)
}
  0x18   :  { %41 = dma.hbm_to_vmem [thread:$0]  %s309_s1, 384, %s36_s17, [#allocation7], %s272_s12, %s272_s12, %s273_s13  }
  0x19   :  { %265 = dma.done.wait [#allocation4], 384  }
  0x1a   :  { %266 = vsyncadd [#allocation4], 4294966912 }
  0x1b   :  { %267 = dma.done.wait [#allocation7], 384  }
  0x1c   :  { %268 = vsyncadd [#allocation7], 4294966912  ;;  %v90_v0 = vld [vmem:[#allocation6] sm:$0xff]  ;;  %v57_v1 = vld [vmem:[#allocation3] sm:$0xff]  ;;  %s275_s0 = smov [#allocation8]  }
  0x1d   :  { %v91_v2 = vld [vmem:[#allocation6 + $0x8] sm:$0xff]  ;;  %v93_v3 = vmul.f32 0.25, %v90_v0  ;;  %v60_v4 = vmul.f32 0.25, %v57_v1  ;;  %v58_v5 = vld [vmem:[#allocation3 + $0x8] sm:$0xff]  ;;  %v59_v9 = vld [vmem:[#allocation3 + $0x10] sm:$0xff]  ;;  %s160_s1 = sshll.u32 %s275_s0, 4  ;;  %s161_s1 = int_to_ptr.vmem [resolvable:$true] %s160_s1 }
  0x1e   :  { %v94_v6 = vmul.f32 0.25, %v91_v2  ;;  %v61_v7 = vmul.f32 0.25, %v58_v5  ;;  %v92_v8 = vld [vmem:[#allocation6 + $0x10] sm:$0xff]  ;;  %v62_v11 = vmul.f32 0.25, %v59_v9  ;;  %s245_s21 = scalar_lea.vmem %s161_s1, 128  ;;  %p250_p11 = scmp.lt.s32.totalorder %s161_s1, %s161_s1 }
  0x1f   :  { %96 = vmax.xlane.f32.xlu1 %v93_v3  ;;  %63 = vmax.xlane.f32.xlu0 %v60_v4  ;;  %v95_v10 = vmul.f32 0.25, %v92_v8  ;;  %p246_p10 = scmp.ne.s32.totalorder %s161_s1, %s245_s21  ;;  %p251_p12 = scmp.lt.s32.totalorder %s245_s21, %s245_s21 }
  0x21   :  { %p252_p13 = por %p251_p12, %p250_p11 }
  0x23   :  { %98 = vmax.xlane.f32.xlu1 %v94_v6  ;;  %65 = vmax.xlane.f32.xlu0 %v61_v7  ;;  %p253_p0 = pnand %p252_p13, %p246_p10 }
  0x27   :  { %100 = vmax.xlane.f32.xlu1 %v95_v10  ;;  %67 = vmax.xlane.f32.xlu0 %v62_v11 }
  0xa8   :  { %v97_v12 = vpop.xlane.xlu1 %96  ;;  %v64_v13 = vpop.xlane.xlu0 %63 }
  0xa9   :  { %v297_v14 = vsub.f32 %v93_v3, %v97_v12  ;;  %v299_v15 = vsub.f32 %v60_v4, %v64_v13 }
  0xab   :  { %v72_v16 = vmul.f32 1.442695, %v299_v15  ;;  %v132_v17 = vsub.f32 %v297_v14, %v299_v15  ;;  %v105_v18 = vmul.f32 1.442695, %v297_v14 }
  0xac   :  { %v99_v19 = vpop.xlane.xlu1 %98  ;;  %v66_v20 = vpop.xlane.xlu0 %65 }
  0xad   :  { %v103_v21 = vsub.f32 %v94_v6, %v99_v19  ;;  %v70_v22 = vsub.f32 %v61_v7, %v66_v20  ;;  %175 = vpow2.f32 %v72_v16 }
  0xae   :  { %177 = vpow2.f32 %v105_v18 }
  0xaf   :  { %v74_v23 = vmul.f32 1.442695, %v70_v22  ;;  %v133_v24 = vsub.f32 %v103_v21, %v70_v22  ;;  %v107_v25 = vmul.f32 1.442695, %v103_v21 }
  0xb0   :  { %v101_v26 = vpop.xlane.xlu1 %100  ;;  %v68_v27 = vpop.xlane.xlu0 %67 }
  0xb1   :  { %v104_v28 = vsub.f32 %v95_v10, %v101_v26  ;;  %v71_v29 = vsub.f32 %v62_v11, %v68_v27  ;;  %179 = vpow2.f32 %v74_v23 }
  0xb2   :  { %181 = vpow2.f32 %v107_v25 }
  0xb3   :  { %v76_v30 = vmul.f32 1.442695, %v71_v29  ;;  %v134_v31 = vsub.f32 %v104_v28, %v71_v29  ;;  %v109_v32 = vmul.f32 1.442695, %v104_v28 }
  0xb5   :  { %183 = vpow2.f32 %v76_v30 }
  0xb6   :  { %185 = vpow2.f32 %v109_v32 }
  0xba   :  { %v176_v33 = vpop.eup %175 }
  0xbb   :  { %78 = vadd.xlane.f32.xlu0 %v176_v33  ;;  %v178_v34 = vpop.eup %177 }
  0xbe   :  { %v180_v35 = vpop.eup %179 }
  0xbf   :  { %111 = vadd.xlane.f32.xlu0 %v178_v34  ;;  %80 = vadd.xlane.f32.xlu1 %v180_v35  ;;  %v182_v36 = vpop.eup %181 }
  0xc2   :  { %v184_v37 = vpop.eup %183 }
  0xc3   :  { %113 = vadd.xlane.f32.xlu1 %v182_v36  ;;  %82 = vadd.xlane.f32.xlu0 %v184_v37  ;;  %v186_v38 = vpop.eup %185 }
  0xc7   :  { %115 = vadd.xlane.f32.xlu1 %v186_v38 }
 0x144   :  { %v79_v39 = vpop.xlane.xlu0 %78 }
 0x145   :  { %187 = vlog2.f32 %v79_v39 }
 0x148   :  { %v81_v40 = vpop.xlane.xlu1 %80  ;;  %v112_v41 = vpop.xlane.xlu0 %111 }
 0x149   :  { %189 = vlog2.f32 %v112_v41 }
 0x14a   :  { %191 = vlog2.f32 %v81_v40 }
 0x14b   :  { %193 = vrcp.f32 %v112_v41 }
 0x14c   :  { %v114_v42 = vpop.xlane.xlu1 %113  ;;  %v83_v43 = vpop.xlane.xlu0 %82 }
 0x14d   :  { %195 = vlog2.f32 %v114_v42 }
 0x14e   :  { %197 = vrcp.f32 %v114_v42 }
 0x14f   :  { %199 = vlog2.f32 %v83_v43 }
 0x150   :  { %v116_v44 = vpop.xlane.xlu1 %115 }
 0x151   :  { %201 = vlog2.f32 %v116_v44 }
 0x152   :  { %203 = vrcp.f32 %v116_v44  ;;  %v188_v45 = vpop.eup %187 }
 0x153   :  { %v85_v48 = vmul.f32 0.6931472, %v188_v45 }
 0x156   :  { %v190_v46 = vpop.eup %189 }
 0x157   :  { %v192_v47 = vpop.eup %191  ;;  %v118_v49 = vmul.f32 0.6931472, %v190_v46 }
 0x158   :  { %v194_v50 = vpop.eup %193  ;;  %v87_v54 = vmul.f32 0.6931472, %v192_v47 }
 0x159   :  { %v135_v52 = vsub.f32 %v85_v48, %v118_v49  ;;  %v129_v63 = vmul.f32 %v194_v50, %v178_v34 }
 0x15a   :  { %v196_v51 = vpop.eup %195 }
 0x15b   :  { %v198_v53 = vpop.eup %197  ;;  %v120_v55 = vmul.f32 0.6931472, %v196_v51  ;;  %v138_v57 = vadd.f32 %v135_v52, %v132_v17 }
 0x15c   :  { %v200_v56 = vpop.eup %199  ;;  %v130_v0 = vmul.f32 %v198_v53, %v182_v36 }
 0x15d   :  { %v136_v58 = vsub.f32 %v87_v54, %v120_v55  ;;  %v89_v59 = vmul.f32 0.6931472, %v200_v56  ;;  %v141_v3 = vmul.f32 %v138_v57, %v129_v63 }
 0x15e   :  { %v202_v60 = vpop.eup %201 }
 0x15f   :  { %v139_v61 = vadd.f32 %v136_v58, %v133_v24  ;;  %v122_v62 = vmul.f32 0.6931472, %v202_v60  ;;  %v204_v1 = vpop.eup %203 }
 0x160   :  { %v131_v6 = vmul.f32 %v204_v1, %v186_v38 }
 0x161   :  { %v137_v2 = vsub.f32 %v89_v59, %v122_v62  ;;  %v142_v4 = vmul.f32 %v139_v61, %v130_v0 }
 0x163   :  { %v140_v5 = vadd.f32 %v137_v2, %v134_v31  ;;  %v145_v7 = vadd.f32 %v142_v4, %v141_v3 }
 0x165   :  { %v143_v8 = vmul.f32 %v140_v5, %v131_v6 }
 0x167   :  { %v146_v9 = vadd.f32 %v145_v7, %v143_v8 }
 0x169   :  { %153 = vst [vmem:[#allocation8] sm:$0xff] %v146_v9 }
 0x16a   :  { %256 = shalt.err (!%p253_p0)
}
 0x16b   :  { %163 = dma.vmem_to_hbm [thread:$0]  %s161_s1, 128, %s310_s2, [#allocation5]  }
 0x16c   :  { %269 = dma.done.wait [#allocation5], 128  }
 0x16d   :  { %270 = vsyncadd [#allocation5], 4294967168 }
 0x16e   :  { %167 = vsyncpa [#allocation4], 1 }
 0x16f   :  { %168 = vsyncpa [#allocation7], 1 }
 0x170   :  { %169 = vsyncpa [#allocation5], 1 }

</bundles_post_ra>
